<compile_context>
chip_gen: v6e
topology: v6e:2x2x1
jax: 0.10.0
libtpu: 0.0.40
codegen_flags: <defaults>
</compile_context>

<pallas_src>
import functools

import jax
import jax.numpy as jnp
import numpy as np
from jax.experimental import pallas as pl
from jax.experimental.pallas import tpu as pltpu


def _round_up(x, m):
    return (x + m - 1) // m * m


def _snap_tile(pref, n128):
    """Largest power-of-two multiple of 128 that is <= min(pref, n128)."""
    cap = max(128, min(int(pref), int(n128)))
    t = 128
    while t * 2 <= cap:
        t *= 2
    return t


# ---------------------------------------------------------------------------
# Kernel 1: projection h = x @ W (with a ones column at `ones_col`) and the
# per-node attention reductions s1[i] = 0.5*c[:F].h[i], s2[j] = 0.5*c[F:].h[j].
# ---------------------------------------------------------------------------
def _project_kernel(x_ref, w_ref, c1_ref, c2_ref, h_ref, s1_ref, s2_ref, *,
                    ones_col):
    h = jnp.dot(x_ref[...], w_ref[...], preferred_element_type=jnp.float32)
    # Write 1.0 into the spare padded column so kernel 2's spmm matmul also
    # accumulates the e-rowsum for free.  c1/c2 are zero there, so s1/s2 are
    # unaffected.
    col = jax.lax.broadcasted_iota(jnp.int32, h.shape, 1)
    h = jnp.where(col == ones_col, 1.0, h)
    h_ref[...] = h
    # VPU reductions (avoid degenerate 1-lane MXU matmuls).
    s1_ref[...] = jnp.sum(h * c1_ref[...], axis=1, keepdims=True)
    s2_ref[...] = jnp.sum(h * c2_ref[...], axis=1, keepdims=True)


# ---------------------------------------------------------------------------
# Kernel 2: tiled masked 'mx' attention + spmm reduction over column tiles.
# ---------------------------------------------------------------------------
def _attn_kernel(nnz_ref, hi_ref, hj_ref, s1_ref, s2_ref, adj_ref, out_ref,
                 num_acc, *, alpha, ones_col):
    i = pl.program_id(0)
    j = pl.program_id(1)
    nj = pl.num_programs(1)

    @pl.when(j == 0)
    def _init():
        num_acc[...] = jnp.zeros_like(num_acc)

    # Block-sparse skip: no edges in this (i, j) adjacency block -> no compute.
    @pl.when(nnz_ref[i * nj + j] > 0)
    def _compute():
        hi = hi_ref[...]                               # (ti, fp) f32
        hj = hj_ref[...]                               # (tj, fp) f32
        # C[r, c] = h_i[r] . h_j[c] + 1  (the +1 comes from the ones column).
        c_ = jax.lax.dot_general(hi, hj, (((1,), (1,)), ((), ())),
                                 preferred_element_type=jnp.float32)
        # sigmoid(x) = 0.5*(1 + tanh(x/2)); the -0.5 corrects the ones column.
        t = jnp.tanh(0.5 * c_ - 0.5)
        # s1/s2 carry a 0.5 factor (folded into c1/c2 in the wrapper), so
        # z = (s1+s2) * sigmoid(h_i . h_j) with one fewer per-element multiply.
        s_half = s1_ref[...] + s2_ref[...]             # (ti,1)+(1,tj)->(ti,tj)
        z = s_half + s_half * t
        # exp(-leakyrelu(z)) == exp(min(-z, -alpha*z)) for 0 < alpha < 1.
        # Fold the adjacency mask in before the exp: masked lanes underflow to 0.
        arg = jnp.where(adj_ref[...] != 0,
                        jnp.minimum(-z, (-alpha) * z),
                        -1e30)
        e = jnp.exp(arg)
        # E @ h_j; column `ones_col` of hj is all ones, so that column of the
        # accumulator is the e-rowsum (no separate XLU row reduce needed).
        num_acc[...] += jnp.dot(e, hj, preferred_element_type=jnp.float32)

    @pl.when(j == nj - 1)
    def _finalize():
        num = num_acc[...]
        den = num[:, ones_col:ones_col + 1]            # e_rowsum, (ti, 1)
        h_prime = num * pl.reciprocal(den + 1e-8, approx=False)
        # concat=True -> ELU
        out_ref[...] = jnp.where(h_prime > 0, h_prime, jnp.exp(h_prime) - 1.0)


# ---------------------------------------------------------------------------
# Wrapper
# ---------------------------------------------------------------------------
def sp_hop_attention(x, W, a, adj, *, alpha, block_i=512, block_j=512):
    N, fin = x.shape
    fout = W.shape[1]

    # --- tile / padding selection (tile-aligned; >= 2 row tiles if possible) -
    n128 = _round_up(N, 128)
    ti = _snap_tile(block_i, n128)
    tj = _snap_tile(block_j, n128)
    if ti >= n128 and n128 > 128:
        ti = max(128, ti // 2)       # keep >= 2 row tiles for v7x megacore
    n_pad = _round_up(N, max(ti, tj))   # both ti, tj (pow2*128) divide n_pad
    ni, nj = n_pad // ti, n_pad // tj

    # Feature width: lane-dense with a guaranteed spare column at `fout`
    # (even when fout is already a multiple of 128) for the fused e-rowsum.
    fp = _round_up(fout + 1, 128)
    ones_col = fout

    # --- cheap parameter glue (O(N*F), O(F^2)) -----------------------------
    xf = jnp.pad(x.astype(jnp.float32), ((0, n_pad - N), (0, 0)))
    wf = jnp.pad(W.astype(jnp.float32), ((0, 0), (0, fp - fout)))
    c = jnp.sum(a.astype(jnp.float32), axis=0)               # (2*fout,)
    # 0.5 factor of the tanh-based sigmoid folded in here (O(fout) work).
    c1 = jnp.pad(0.5 * c[:fout], (0, fp - fout)).reshape(1, fp)
    c2 = jnp.pad(0.5 * c[fout:], (0, fp - fout)).reshape(1, fp)

    # int8 adjacency mask (4x less HBM traffic than f32) + flat nnz table.
    adj_i8 = jnp.pad((adj != 0).astype(jnp.int8),
                     ((0, n_pad - N), (0, n_pad - N)))
    block_nnz = jnp.sum(adj_i8.reshape(ni, ti, nj, tj), axis=(1, 3),
                        dtype=jnp.int32).reshape(-1)          # (ni*nj,) int32

    # --- kernel 1: projection ----------------------------------------------
    proj = functools.partial(_project_kernel, ones_col=ones_col)
    h, s1, s2 = pl.pallas_call(
        proj,
        out_shape=(
            jax.ShapeDtypeStruct((n_pad, fp), jnp.float32),
            jax.ShapeDtypeStruct((n_pad, 1), jnp.float32),
            jax.ShapeDtypeStruct((n_pad, 1), jnp.float32),
        ),
        grid=(ni,),
        in_specs=[
            pl.BlockSpec((ti, fin), lambda i: (i, 0)),
            pl.BlockSpec((fin, fp), lambda i: (0, 0)),
            pl.BlockSpec((1, fp), lambda i: (0, 0)),
            pl.BlockSpec((1, fp), lambda i: (0, 0)),
        ],
        out_specs=(
            pl.BlockSpec((ti, fp), lambda i: (i, 0)),
            pl.BlockSpec((ti, 1), lambda i: (i, 0)),
            pl.BlockSpec((ti, 1), lambda i: (i, 0)),
        ),
        compiler_params=pltpu.CompilerParams(
            dimension_semantics=("parallel",)),
    )(xf, wf, c1, c2)

    s2_row = s2.reshape(1, n_pad)

    # --- kernel 2: tiled masked attention + spmm reduction ------------------
    kernel = functools.partial(_attn_kernel, alpha=float(alpha),
                               ones_col=ones_col)
    out_pad = pl.pallas_call(
        kernel,
        out_shape=jax.ShapeDtypeStruct((n_pad, fp), jnp.float32),
        grid_spec=pltpu.PrefetchScalarGridSpec(
            num_scalar_prefetch=1,
            grid=(ni, nj),
            in_specs=[
                pl.BlockSpec((ti, fp), lambda i, j, nnz: (i, 0)),   # h rows
                pl.BlockSpec((tj, fp), lambda i, j, nnz: (j, 0)),   # h cols
                pl.BlockSpec((ti, 1), lambda i, j, nnz: (i, 0)),    # s1
                pl.BlockSpec((1, tj), lambda i, j, nnz: (0, j)),    # s2
                pl.BlockSpec((ti, tj), lambda i, j, nnz: (i, j)),   # adj int8
            ],
            out_specs=pl.BlockSpec((ti, fp), lambda i, j, nnz: (i, 0)),
            scratch_shapes=[
                pltpu.VMEM((ti, fp), jnp.float32),   # spmm numerator + rowsum
            ],
        ),
        compiler_params=pltpu.CompilerParams(
            dimension_semantics=("parallel", "arbitrary"),
            vmem_limit_bytes=32 * 1024 * 1024),
    )(block_nnz, h, h, s1, s2_row, adj_i8)

    return out_pad[:N, :fout]


# ---------------------------------------------------------------------------
# Edge-list reference mirroring the PyTorch forward exactly (att_type='mx').
# ---------------------------------------------------------------------------
def _reference_numpy(x, W, a, adj, alpha):
    x = np.asarray(x, np.float64)
    W = np.asarray(W, np.float64)
    a = np.asarray(a, np.float64)
    adj = np.asarray(adj)
    N = x.shape[0]
    h = x @ W
    ei, ej = np.nonzero(adj)
    edge_h = np.concatenate([h[ei], h[ej]], axis=1).T        # (2F, E)
    s = (a @ edge_h).sum(0)                                   # (E,)
    conv = (h[ei] * h[ej]).sum(1)                             # (E,)
    z = s * (1.0 / (1.0 + np.exp(-conv)))                     # 'mx'
    lrelu = np.where(z >= 0, z, alpha * z)
    edge_e = np.exp(-lrelu)
    e_rowsum = np.zeros((N, 1))
    np.add.at(e_rowsum[:, 0], ei, edge_e)
    h_prime = np.zeros_like(h)
    np.add.at(h_prime, ei, edge_e[:, None] * h[ej])
    h_prime = h_prime / (e_rowsum + 1e-8)
    return np.where(h_prime > 0, h_prime, np.exp(h_prime) - 1.0)


if __name__ == "__main__":
    def _make_case(key, N, fin, fout, density, add_empty_block):
        kx, kadj, kW, ka = jax.random.split(key, 4)
        gain = 1.414
        # Deterministic xavier_normal_-style init (gain=1.414).
        std_W = gain * np.sqrt(2.0 / (fin + fout))
        W = std_W * jax.random.normal(kW, (fin, fout), jnp.float32)
        std_a = gain * np.sqrt(2.0 / (2 * fout + 2 * fout))
        a = std_a * jax.random.normal(ka, (2 * fout, 2 * fout), jnp.float32)
        x = jax.random.normal(kx, (N, fin), jnp.float32)
        adj = jax.random.uniform(kadj, (N, N)) < density
        if add_empty_block:
            # One fully empty 128x128 block (rows < 128, cols >= 128) to
            # exercise the block-skip path.
            empty = (jnp.arange(N)[:, None] < 128) & (jnp.arange(N)[None, :] >= 128)
            adj = adj & ~empty
        adj = adj | jnp.eye(N, dtype=bool)
        return x, W, a, adj.astype(jnp.float32)

    alpha = 0.2              # LeakyReLU negative slope
    key = jax.random.PRNGKey(0)
    k1, k2 = jax.random.split(key)

    # Case 1: small explicit tiles -> multi-tile j accumulation, padding and
    # the empty-block skip path (fout=32: ones column lives in natural padding).
    x, W, a, adj = _make_case(k1, 200, 32, 32, 0.08, True)
    out = jax.block_until_ready(
        sp_hop_attention(x, W, a, adj, alpha=alpha, block_i=128, block_j=128))
    ref = _reference_numpy(x, W, a, adj, alpha)
    np.testing.assert_allclose(np.asarray(out), ref, rtol=2e-4, atol=2e-5)

    # Case 2: default (large) tiles and fout already a multiple of 128, so the
    # fused-rowsum trick must allocate an explicit extra lane block.
    x, W, a, adj = _make_case(k2, 200, 16, 128, 0.10, False)
    out = jax.block_until_ready(
        sp_hop_attention(x, W, a, adj, alpha=alpha))
    ref = _reference_numpy(x, W, a, adj, alpha)
    np.testing.assert_allclose(np.asarray(out), ref, rtol=5e-4, atol=5e-5)

    print("KERNEL_OK")
</pallas_src>

<mosaic_0001>
module attributes {stable_mosaic.version = 11 : i64} {
  func.func @_project_kernel(%arg0: i32, %arg1: memref<128x32xf32, #tpu.memory_space<vmem>>, %arg2: memref<32x128xf32, #tpu.memory_space<vmem>>, %arg3: memref<1x128xf32, #tpu.memory_space<vmem>>, %arg4: memref<1x128xf32, #tpu.memory_space<vmem>>, %arg5: memref<128x128xf32, #tpu.memory_space<vmem>>, %arg6: memref<128x1xf32, #tpu.memory_space<vmem>>, %arg7: memref<128x1xf32, #tpu.memory_space<vmem>>) attributes {dimension_semantics = [#tpu.dimension_semantics<parallel>], iteration_bounds = array<i64: 2>, scalar_prefetch = 0 : i64, scratch_operands = 0 : i64, tpu.core_type = #tpu.core_type<tc>, window_params = [{transform_indices = @transform_0, window_bounds = array<i64: 128, 32>}, {pipeline_mode = #tpu.pipeline_mode<synchronous>, transform_indices = @transform_1, window_bounds = array<i64: 32, 128>}, {pipeline_mode = #tpu.pipeline_mode<synchronous>, transform_indices = @transform_2, window_bounds = array<i64: 1, 128>}, {pipeline_mode = #tpu.pipeline_mode<synchronous>, transform_indices = @transform_3, window_bounds = array<i64: 1, 128>}, {transform_indices = @transform_4, window_bounds = array<i64: 128, 128>}, {transform_indices = @transform_5, window_bounds = array<i64: 128, 1>}, {transform_indices = @transform_6, window_bounds = array<i64: 128, 1>}]} {
    %c0 = arith.constant 0 : index
    %c0_0 = arith.constant 0 : index
    %0 = vector.load %arg1[%c0, %c0_0] : memref<128x32xf32, #tpu.memory_space<vmem>>, vector<128x32xf32>
    %c0_1 = arith.constant 0 : index
    %c0_2 = arith.constant 0 : index
    %1 = vector.load %arg2[%c0_1, %c0_2] : memref<32x128xf32, #tpu.memory_space<vmem>>, vector<32x128xf32>
    %cst = arith.constant dense<0.000000e+00> : vector<128x128xf32>
    %2 = tpu.matmul %0, %1, %cst {dimension_numbers = #tpu.dot_dimension_numbers<[1], [0], [0], [1], [0, 0, 1, 1], [], []>} : vector<128x32xf32>, vector<32x128xf32>, vector<128x128xf32> -> vector<128x128xf32>
    %3 = tpu.iota {dimensions = array<i32: 1>} : vector<128x128xi32>
    %c32_i32 = arith.constant 32 : i32
    %4 = vector.broadcast %c32_i32 : i32 to vector<128x128xi32>
    %5 = arith.cmpi eq, %3, %4 : vector<128x128xi32>
    %cst_3 = arith.constant 1.000000e+00 : f32
    %6 = vector.broadcast %cst_3 : f32 to vector<128x128xf32>
    %7 = arith.select %5, %6, %2 : vector<128x128xi1>, vector<128x128xf32>
    %c0_4 = arith.constant 0 : index
    %c0_5 = arith.constant 0 : index
    %8 = vector.load %arg5[%c0_4, %c0_5] : memref<128x128xf32, #tpu.memory_space<vmem>>, vector<128x128xf32>
    tpu.vector_store %arg5[%c0_4, %c0_5], %7 {strides = array<i32>} : memref<128x128xf32, #tpu.memory_space<vmem>>, vector<128x128xf32>,
    %c0_6 = arith.constant 0 : index
    %c0_7 = arith.constant 0 : index
    %9 = vector.load %arg3[%c0_6, %c0_7] : memref<1x128xf32, #tpu.memory_space<vmem>>, vector<1x128xf32>
    %10 = vector.broadcast %9 : vector<1x128xf32> to vector<128x128xf32>
    %11 = arith.mulf %7, %10 : vector<128x128xf32>
    %cst_8 = arith.constant dense<0.000000e+00> : vector<128xf32>
    %12 = vector.multi_reduction <add>, %11, %cst_8 [1] : vector<128x128xf32> to vector<128xf32>
    %13 = vector.shape_cast %12 : vector<128xf32> to vector<128x1xf32>
    %c0_9 = arith.constant 0 : index
    %c0_10 = arith.constant 0 : index
    %14 = vector.load %arg6[%c0_9, %c0_10] : memref<128x1xf32, #tpu.memory_space<vmem>>, vector<128x1xf32>
    tpu.vector_store %arg6[%c0_9, %c0_10], %13 {strides = array<i32>} : memref<128x1xf32, #tpu.memory_space<vmem>>, vector<128x1xf32>,
    %c0_11 = arith.constant 0 : index
    %c0_12 = arith.constant 0 : index
    %15 = vector.load %arg4[%c0_11, %c0_12] : memref<1x128xf32, #tpu.memory_space<vmem>>, vector<1x128xf32>
    %16 = vector.broadcast %15 : vector<1x128xf32> to vector<128x128xf32>
    %17 = arith.mulf %7, %16 : vector<128x128xf32>
    %cst_13 = arith.constant dense<0.000000e+00> : vector<128xf32>
    %18 = vector.multi_reduction <add>, %17, %cst_13 [1] : vector<128x128xf32> to vector<128xf32>
    %19 = vector.shape_cast %18 : vector<128xf32> to vector<128x1xf32>
    %c0_14 = arith.constant 0 : index
    %c0_15 = arith.constant 0 : index
    %20 = vector.load %arg7[%c0_14, %c0_15] : memref<128x1xf32, #tpu.memory_space<vmem>>, vector<128x1xf32>
    tpu.vector_store %arg7[%c0_14, %c0_15], %19 {strides = array<i32>} : memref<128x1xf32, #tpu.memory_space<vmem>>, vector<128x1xf32>,
    return
  }
  func.func @transform_0(%arg0: i32) -> (i32, i32) {
    %c0_i32 = arith.constant 0 : i32
    %c0_i32_0 = arith.constant 0 : i32
    return %arg0, %c0_i32 : i32, i32
  }
  func.func @transform_1(%arg0: i32) -> (i32, i32) {
    %c0_i32 = arith.constant 0 : i32
    %c0_i32_0 = arith.constant 0 : i32
    %c0_i32_1 = arith.constant 0 : i32
    return %c0_i32, %c0_i32_0 : i32, i32
  }
  func.func @transform_2(%arg0: i32) -> (i32, i32) {
    %c0_i32 = arith.constant 0 : i32
    %c0_i32_0 = arith.constant 0 : i32
    %c0_i32_1 = arith.constant 0 : i32
    return %c0_i32, %c0_i32_0 : i32, i32
  }
  func.func @transform_3(%arg0: i32) -> (i32, i32) {
    %c0_i32 = arith.constant 0 : i32
    %c0_i32_0 = arith.constant 0 : i32
    %c0_i32_1 = arith.constant 0 : i32
    return %c0_i32, %c0_i32_0 : i32, i32
  }
  func.func @transform_4(%arg0: i32) -> (i32, i32) {
    %c0_i32 = arith.constant 0 : i32
    %c0_i32_0 = arith.constant 0 : i32
    return %arg0, %c0_i32 : i32, i32
  }
  func.func @transform_5(%arg0: i32) -> (i32, i32) {
    %c0_i32 = arith.constant 0 : i32
    %c0_i32_0 = arith.constant 0 : i32
    return %arg0, %c0_i32 : i32, i32
  }
  func.func @transform_6(%arg0: i32) -> (i32, i32) {
    %c0_i32 = arith.constant 0 : i32
    %c0_i32_0 = arith.constant 0 : i32
    return %arg0, %c0_i32 : i32, i32
  }
}

</mosaic_0001>

<bundles_post_ra>
// kernel: tpu_custom_call.1
= control target key start
LH: loop header
LB: loop body
LE: loop exit
PB: predicated region body
PF: predicated region fallthrough
CT: control target
= control target key end

     0   :  { %12 = vsyncpa [#allocation3], 0  ;;  %s1378_s0 = inlined_call_operand.vmem [shape: f32[256,32], index: 0, kind: input, shape index: {}]   ;;  %s1379_s1 = inlined_call_operand.vmem [shape: f32[32,128], index: 1, kind: input, shape index: {}]   ;;  %s1380_s2 = inlined_call_operand.vmem [shape: f32[1,128], index: 2, kind: input, shape index: {}]   ;;  %s1381_s3 = inlined_call_operand.vmem [shape: f32[1,128], index: 3, kind: input, shape index: {}]   ;;  %s1382_s4 = inlined_call_operand.hbm [shape: f32[256,128], index: 4, kind: output, shape index: {0}]   ;;  %s1383_s5 = inlined_call_operand.vmem [shape: f32[256,1], index: 5, kind: output, shape index: {1}]   ;;  %s1384_s6 = inlined_call_operand.vmem [shape: f32[256,1], index: 6, kind: output, shape index: {2}]  }
   0x1   :  { %14 = vsyncpa [#allocation3 + $0x1], 0  ;;  %s1052_s21 = smov 0   ;;  %s1054_s22 = smov 0  }
   0x2   :  { %s1056_s23 = smov 0   ;;  %s1058_s24 = smov 0  }
   0x3 LB: > { %s1073_s25 = sadd.s32 4294967295, %s1012_s24   ;;  %s816_s26 = sadd.s32 4294967294, %s1012_s24   ;;  %s1012_s24 = sphi %s1058_s24, %s1390_s24   ;;  %s1008_s23 = sphi %s1056_s23, %s1389_s23   ;;  %s1004_s22 = sphi %s1054_s22, %s1388_s22   ;;  %s1000_s21 = sphi %s1052_s21, %s1387_s21  }
   0x4   : > { %s1077_s27 = sadd.s32 1, %s1012_s24   ;;  %s116_s28 = sadd.s32 1, %s1008_s23 }
   0x5   : > { %s113_s29 = ssub.s32 %s1012_s24, %s1077_s27  ;;  %p126_p0 = scmp.ne.s32.totalorder %s1008_s23, %s1004_s22 }
   0x6   : > { %p114_p1 = scmp.eq.s32.totalorder %s113_s29, 0  ;;  %p127_p2 = scmp.eq.s32.totalorder %s1073_s25, 1 }
   0x7   : > { %p132_p3 = scmp.ne.s32.totalorder %s1004_s22, %s1000_s21  ;;  %p133_p4 = scmp.eq.s32.totalorder %s816_s26, 1 }
   0x8   : > { %s1088_s30 = scalar_select %p114_p1, %s1008_s23, %s116_s28  }
   0x9   : > { %p1090_p5 = por %p127_p2, %p126_p0  ;;  %p1094_p6 = por %p133_p4, %p132_p3 }
   0xa   : > { %p819_p7 = scmp.ge.s32.totalorder %s1012_s24, 1  ;;  %p221_p8 = scmp.lt.s32.totalorder %s1012_s24, 3 }
   0xc   : > { %p222_p9 = pnand %p819_p7, %p221_p8 }
   0xd   : > { %s821_s13 = sshll.u32 (!%p222_p9), %s1073_s25, 4  ;;  %s244_s28 = sand.u32 (!%p222_p9), 1, %s1004_s22  }
   0xe   : > { %225 = sbr.rel (%p222_p9) target bundleno = 424 (0x1a8), region = 36  ;;  %p262_p10 = scmp.lt.s32.totalorder (!%p222_p9), %s821_s13, 31 }
   0xf   : > { %s820_s29 = sshll.u32 (!%p222_p9), %s244_s28, 7  ;;  %s850_s14 = sshll.u32 (!%p222_p9), %s1073_s25, 11 }
  0x10   : > { %s1168_s11 = scalar_lea.vmem (!%p222_p9), [#allocation2], %s820_s29  ;;  %s1256_s19 = scalar_lea.hbm (!%p222_p9), %s1382_s4, %s850_s14 }
  0x11   : > { %s696_s15 = sshll.u32 (!%p222_p9), %s1168_s11, 4  ;;  %s1262_s20 = scalar_lea.sflag (!%p222_p9), [#allocation3], %s244_s28  ;;  %s1258_s15 = int_to_ptr.vmem [resolvable:$true] %s696_s15 }
  0x12   : > { %s1014_s25 = smov (!%p222_p9), [#allocation2]  }
  0x13   : > { %v299_v0 = vld [vmem:[%s1379_s1 + $0x18] sm:$0xff]  ;;  %v298_v1 = vld [vmem:[%s1379_s1 + $0x10] sm:$0xff]  ;;  %v297_v2 = vld [vmem:[%s1379_s1 + $0x8] sm:$0xff]  ;;  %s1392_s13 = smov (!%p262_p10, %s821_s13), 31  ;;  %vm300_vm0 = vcmask 261120   ;;  %v494_v20 = vlaneseq  ;;  %s956_s29 = sshll.u32 %s1014_s25, 4  ;;  %s957_s29 = int_to_ptr.vmem [resolvable:$false] %s956_s29 }
  0x14   : > { %871 = vmatprep.subr.mxu0 %v299_v0  ;;  %903 = vmatprep.subr.mxu1 %v299_v0  ;;  %v296_v3 = vld [vmem:[%s1379_s1] sm:$0xff]  ;;  %s1113_s18 = sshll.u32 %s1392_s13, 3  ;;  %s958_s9 = scalar_lea.vmem %s957_s29, 4096 }
  0x15   : > { %872 = vmatpush3.msra.mxu0 %v299_v0  ;;  %907 = vmatpush3.msra.mxu1 %v299_v0  ;;  %s1119_s26 = scalar_lea.vmem %s1378_s0, %s1113_s18  ;;  %v1154_v21 = vand.u32 127, %v494_v20  ;;  %v1162_v22 = vld [vmem:[%s1380_s2] ss:$0 sm:$0xff]  ;;  %p959_p0 = scmp.lt.s32.totalorder %s1258_s15, %s957_s29 }
  0x16   : > { %873 = vmatprep.subr.mxu0 %v298_v1  ;;  %904 = vmatprep.subr.mxu1 %v298_v1  ;;  %v280_v4 = vld [vmem:[%s1119_s26] sm:$0xff]  ;;  %v281_v6 = vld [vmem:[%s1119_s26 + $0x8] sm:$0xff]  ;;  %v282_v8 = vld [vmem:[%s1119_s26 + $0x10] sm:$0xff] }
  0x17   : > { %874 = vmatpush3.msra.mxu0 %v298_v1  ;;  %908 = vmatpush3.msra.mxu1 %v298_v1  ;;  %v288_v5 = vld [vmem:[%s1119_s26 + $0x40] sm:$0xff]  ;;  %v289_v7 = vld [vmem:[%s1119_s26 + $0x48] sm:$0xff]  ;;  %v290_v9 = vld [vmem:[%s1119_s26 + $0x50] sm:$0xff]  ;;  %vm496_vm1 = vcmp.eq.s32.totalorder %v1154_v21, 32 }
  0x18   : > { %875 = vmatprep.subr.mxu0 %v297_v2  ;;  %905 = vmatprep.subr.mxu1 %v297_v2  ;;  %v283_v10 = vld [vmem:[%s1119_s26 + $0x18] sm:$0xff]  ;;  %v284_v12 = vld [vmem:[%s1119_s26 + $0x20] sm:$0xff]  ;;  %v285_v14 = vld [vmem:[%s1119_s26 + $0x28] sm:$0xff] }
  0x19   : > { %876 = vmatpush3.msra.mxu0 %v297_v2  ;;  %909 = vmatpush3.msra.mxu1 %v297_v2  ;;  %v291_v11 = vld [vmem:[%s1119_s26 + $0x58] sm:$0xff]  ;;  %v292_v13 = vld [vmem:[%s1119_s26 + $0x60] sm:$0xff]  ;;  %v293_v15 = vld [vmem:[%s1119_s26 + $0x68] sm:$0xff] }
  0x1a   : > { %877 = vmatprep.subr.mxu0 %v296_v3  ;;  %906 = vmatprep.subr.mxu1 %v296_v3  ;;  %v286_v16 = vld [vmem:[%s1119_s26 + $0x30] sm:$0xff]  ;;  %v287_v18 = vld [vmem:[%s1119_s26 + $0x38] sm:$0xff]  ;;  %v1181_v33 = vld [vmem:[%s1381_s3] ss:$0 sm:$0xff] }
  0x1b   : > { %878 = vmatpush3.msra.mxu0 %v296_v3  ;;  %910 = vmatpush3.msra.mxu1 %v296_v3  ;;  %v294_v17 = vld [vmem:[%s1119_s26 + $0x70] sm:$0xff]  ;;  %v295_v19 = vld [vmem:[%s1119_s26 + $0x78] sm:$0xff]  ;;  %s952_s26 = scalar_lea.vmem %s1258_s15, 2048 }
  0x1c   : > { %879 = vmatprep.mubr.msk.f32.mxu0 %vm300_vm0, %v280_v4  ;;  %891 = vmatprep.mubr.msk.f32.mxu1 %vm300_vm0, %v288_v5  ;;  %p953_p11 = scmp.ne.s32.totalorder %s1258_s15, %s952_s26  ;;  %p960_p1 = scmp.lt.s32.totalorder %s958_s9, %s952_s26 }
  0x1d   : > { %880 = vmatmul.mubr.msk.f32.vlgmr.msra.gmra.mxu0 %vm300_vm0, %v281_v6  ;;  %892 = vmatmul.mubr.msk.f32.vlgmr.msra.gmra.mxu1 %vm300_vm0, %v289_v7 }
  0x1e   : > { %882 = vmatprep.mubr.msk.f32.mxu0 %vm300_vm0, %v282_v8  ;;  %894 = vmatprep.mubr.msk.f32.mxu1 %vm300_vm0, %v290_v9  ;;  %p954_p12 = pnand %p953_p11, %p1090_p5  ;;  %p961_p2 = por %p960_p1, %p959_p0 }
  0x20   : > { %p955_p13 = pneg %p954_p12 }
  0x21   : > { %883 = vmatmul.mubr.msk.f32.gmra.mxu0 %vm300_vm0, %v283_v10  ;;  %895 = vmatmul.mubr.msk.f32.gmra.mxu1 %vm300_vm0, %v291_v11 }
  0x22   : > { %885 = vmatprep.mubr.msk.f32.mxu0 %vm300_vm0, %v284_v12  ;;  %897 = vmatprep.mubr.msk.f32.mxu1 %vm300_vm0, %v292_v13  ;;  %p962_p3 = pnand %p961_p2, %p955_p13 }
  0x25   : > { %886 = vmatmul.mubr.msk.f32.gmra.mxu0 %vm300_vm0, %v285_v14  ;;  %898 = vmatmul.mubr.msk.f32.gmra.mxu1 %vm300_vm0, %v293_v15 }
  0x26   : > { %888 = vmatprep.mubr.msk.f32.mxu0 %vm300_vm0, %v286_v16  ;;  %900 = vmatprep.mubr.msk.f32.mxu1 %vm300_vm0, %v294_v17 }
  0x29   : > { %889 = vmatmul.mubr.msk.f32.gmra.mxu0 %vm300_vm0, %v287_v18  ;;  %901 = vmatmul.mubr.msk.f32.gmra.mxu1 %vm300_vm0, %v295_v19 }
  0xdd   : > { %v881_v23 = vpop.f32.mrf.mxu0  ;;  %v893_v24 = vpop.f32.mrf.mxu1 }
  0xde   : > { %v498_v25 = vsel %vm496_vm1, 1.0, %v881_v23  ;;  %v506_v26 = vsel %vm496_vm1, 1.0, %v893_v24 }
  0xdf   : > { %514 = vst [vmem:[%s1168_s11 + $0x8] sm:$0xff] %v498_v25  ;;  %522 = vst [vmem:[%s1168_s11 + $0x48] sm:$0xff] %v506_v26  ;;  %v415_v27 = vpop.f32.mrf.mxu0  ;;  %v455_v28 = vpop.f32.mrf.mxu1  ;;  %v545_v29 = vmul.f32 %v1162_v22, %v506_v26  ;;  %v537_v30 = vmul.f32 %v1162_v22, %v498_v25  ;;  %v609_v38 = vmul.f32 %v1181_v33, %v498_v25 }
  0xe0   : > { %v497_v31 = vsel %vm496_vm1, 1.0, %v415_v27  ;;  %v505_v32 = vsel %vm496_vm1, 1.0, %v455_v28  ;;  %v617_v48 = vmul.f32 %v1181_v33, %v506_v26 }
  0xe1   : > { %513 = vst [vmem:[%s1168_s11] sm:$0xff] %v497_v31  ;;  %521 = vst [vmem:[%s1168_s11 + $0x40] sm:$0xff] %v505_v32  ;;  %570 = vadd.xlane.f32.xlu1 %v545_v29  ;;  %554 = vadd.xlane.f32.xlu0 %v537_v30  ;;  %v884_v34 = vpop.f32.mrf.mxu0  ;;  %v896_v35 = vpop.f32.mrf.mxu1  ;;  %v536_v39 = vmul.f32 %v1162_v22, %v497_v31  ;;  %v544_v49 = vmul.f32 %v1162_v22, %v505_v32 }
  0xe2   : > { %v500_v36 = vsel %vm496_vm1, 1.0, %v884_v34  ;;  %v508_v37 = vsel %vm496_vm1, 1.0, %v896_v35  ;;  %v608_v59 = vmul.f32 %v1181_v33, %v497_v31  ;;  %v616_v1 = vmul.f32 %v1181_v33, %v505_v32 }
  0xe3   : > { %516 = vst [vmem:[%s1168_s11 + $0x18] sm:$0xff] %v500_v36  ;;  %v425_v40 = vpop.f32.mrf.mxu0  ;;  %524 = vst [vmem:[%s1168_s11 + $0x58] sm:$0xff] %v508_v37  ;;  %v465_v41 = vpop.f32.mrf.mxu1  ;;  %v539_v54 = vmul.f32 %v1162_v22, %v500_v36  ;;  %v547_v0 = vmul.f32 %v1162_v22, %v508_v37  ;;  %v611_v3 = vmul.f32 %v1181_v33, %v500_v36 }
  0xe4   : > { %v499_v42 = vsel %vm496_vm1, 1.0, %v425_v40  ;;  %v507_v43 = vsel %vm496_vm1, 1.0, %v465_v41  ;;  %v619_v4 = vmul.f32 %v1181_v33, %v508_v37 }
  0xe5   : > { %626 = vadd.xlane.f32.xlu1 %v609_v38  ;;  %552 = vadd.xlane.f32.xlu0 %v536_v39  ;;  %515 = vst [vmem:[%s1168_s11 + $0x10] sm:$0xff] %v499_v42  ;;  %523 = vst [vmem:[%s1168_s11 + $0x50] sm:$0xff] %v507_v43  ;;  %v887_v44 = vpop.f32.mrf.mxu0  ;;  %v899_v45 = vpop.f32.mrf.mxu1  ;;  %v546_v2 = vmul.f32 %v1162_v22, %v507_v43  ;;  %v610_v5 = vmul.f32 %v1181_v33, %v499_v42 }
  0xe6   : > { %v502_v46 = vsel %vm496_vm1, 1.0, %v887_v44  ;;  %v510_v47 = vsel %vm496_vm1, 1.0, %v899_v45  ;;  %v618_v6 = vmul.f32 %v1181_v33, %v507_v43  ;;  %v538_v7 = vmul.f32 %v1162_v22, %v499_v42 }
  0xe7   : > { %518 = vst [vmem:[%s1168_s11 + $0x28] sm:$0xff] %v502_v46  ;;  %v435_v50 = vpop.f32.mrf.mxu0  ;;  %526 = vst [vmem:[%s1168_s11 + $0x68] sm:$0xff] %v510_v47  ;;  %v475_v51 = vpop.f32.mrf.mxu1  ;;  %v541_v8 = vmul.f32 %v1162_v22, %v502_v46  ;;  %v549_v10 = vmul.f32 %v1162_v22, %v510_v47  ;;  %v613_v12 = vmul.f32 %v1181_v33, %v502_v46 }
  0xe8   : > { %v501_v52 = vsel %vm496_vm1, 1.0, %v435_v50  ;;  %v509_v53 = vsel %vm496_vm1, 1.0, %v475_v51  ;;  %v621_v14 = vmul.f32 %v1181_v33, %v510_v47 }
  0xe9   : > { %642 = vadd.xlane.f32.xlu1 %v617_v48  ;;  %568 = vadd.xlane.f32.xlu0 %v544_v49  ;;  %517 = vst [vmem:[%s1168_s11 + $0x20] sm:$0xff] %v501_v52  ;;  %525 = vst [vmem:[%s1168_s11 + $0x60] sm:$0xff] %v509_v53  ;;  %v890_v55 = vpop.f32.mrf.mxu0  ;;  %v902_v56 = vpop.f32.mrf.mxu1  ;;  %v540_v9 = vmul.f32 %v1162_v22, %v501_v52  ;;  %v548_v11 = vmul.f32 %v1162_v22, %v509_v53 }
  0xea   : > { %v504_v57 = vsel %vm496_vm1, 1.0, %v890_v55  ;;  %v512_v58 = vsel %vm496_vm1, 1.0, %v902_v56  ;;  %v612_v13 = vmul.f32 %v1181_v33, %v501_v52  ;;  %v620_v15 = vmul.f32 %v1181_v33, %v509_v53 }
  0xeb   : > { %520 = vst [vmem:[%s1168_s11 + $0x38] sm:$0xff] %v504_v57  ;;  %v445_v60 = vpop.f32.mrf.mxu0  ;;  %528 = vst [vmem:[%s1168_s11 + $0x78] sm:$0xff] %v512_v58  ;;  %v485_v61 = vpop.f32.mrf.mxu1  ;;  %v543_v16 = vmul.f32 %v1162_v22, %v504_v57  ;;  %v551_v18 = vmul.f32 %v1162_v22, %v512_v58  ;;  %v615_v20 = vmul.f32 %v1181_v33, %v504_v57 }
  0xec   : > { %v503_v62 = vsel %vm496_vm1, 1.0, %v445_v60  ;;  %v511_v63 = vsel %vm496_vm1, 1.0, %v485_v61  ;;  %v623_v23 = vmul.f32 %v1181_v33, %v512_v58 }
  0xed   : > { %624 = vadd.xlane.f32.xlu0 %v608_v59  ;;  %558 = vadd.xlane.f32.xlu1 %v539_v54  ;;  %519 = vst [vmem:[%s1168_s11 + $0x30] sm:$0xff] %v503_v62  ;;  %527 = vst [vmem:[%s1168_s11 + $0x70] sm:$0xff] %v511_v63  ;;  %v542_v17 = vmul.f32 %v1162_v22, %v503_v62  ;;  %v550_v19 = vmul.f32 %v1162_v22, %v511_v63 }
  0xee   : > { %v614_v21 = vmul.f32 %v1181_v33, %v503_v62  ;;  %v622_v24 = vmul.f32 %v1181_v33, %v511_v63 }
  0xf1   : > { %640 = vadd.xlane.f32.xlu0 %v616_v1  ;;  %574 = vadd.xlane.f32.xlu1 %v547_v0 }
  0xf5   : > { %572 = vadd.xlane.f32.xlu0 %v546_v2  ;;  %630 = vadd.xlane.f32.xlu1 %v611_v3 }
  0xf9   : > { %646 = vadd.xlane.f32.xlu1 %v619_v4  ;;  %628 = vadd.xlane.f32.xlu0 %v610_v5 }
  0xfd   : > { %644 = vadd.xlane.f32.xlu0 %v618_v6  ;;  %556 = vadd.xlane.f32.xlu1 %v538_v7 }
 0x101   : > { %562 = vadd.xlane.f32.xlu1 %v541_v8  ;;  %560 = vadd.xlane.f32.xlu0 %v540_v9 }
 0x105   : > { %578 = vadd.xlane.f32.xlu1 %v549_v10  ;;  %576 = vadd.xlane.f32.xlu0 %v548_v11 }
 0x109   : > { %634 = vadd.xlane.f32.xlu1 %v613_v12  ;;  %632 = vadd.xlane.f32.xlu0 %v612_v13 }
 0x10d   : > { %650 = vadd.xlane.f32.xlu1 %v621_v14  ;;  %648 = vadd.xlane.f32.xlu0 %v620_v15 }
 0x111   : > { %566 = vadd.xlane.f32.xlu1 %v543_v16  ;;  %564 = vadd.xlane.f32.xlu0 %v542_v17 }
 0x115   : > { %582 = vadd.xlane.f32.xlu1 %v551_v18  ;;  %580 = vadd.xlane.f32.xlu0 %v550_v19 }
 0x119   : > { %638 = vadd.xlane.f32.xlu1 %v615_v20  ;;  %636 = vadd.xlane.f32.xlu0 %v614_v21 }
 0x11d   : > { %654 = vadd.xlane.f32.xlu1 %v623_v23  ;;  %652 = vadd.xlane.f32.xlu0 %v622_v24 }
 0x11e   : > { %965 = shalt.err (!%p962_p3)
}
 0x11f   : > { %s966_s28 = scalar_lea.hbm %s1256_s19, 2048  ;;  %s970_s12 = scalar_lea.hbm %s1382_s4, 4096 }
 0x120   : > { %p967_p4 = scmp.ne.s32.totalorder %s1256_s19, %s966_s28  ;;  %p971_p9 = scmp.lt.s32.totalorder %s1256_s19, %s1382_s4 }
 0x121   : > { %p972_p10 = scmp.lt.s32.totalorder %s970_s12, %s966_s28 }
 0x122   : > { %p968_p7 = pnand %p967_p4, %p1090_p5 }
 0x123   : > { %p973_p11 = por %p972_p10, %p971_p9 }
 0x124   : > { %p969_p8 = pneg %p968_p7 }
 0x126   : > { %p974_p12 = pnand %p973_p11, %p969_p8 }
 0x128   : > { %977 = shalt.err (!%p974_p12)
}
 0x129   : > { %s1015_s16 = smov 128   ;;  %s1016_s17 = smov 8   ;;  %vm584_vm2 = vcmask 7168  }
 0x12a   : > { %911 = dma.vmem_to_hbm [thread:$0]  (%p1090_p5), %s1258_s15, 2048, %s1256_s19, %s1262_s20, %s1015_s16, %s1015_s16, %s1016_s17  }
 0x12b   : > { %s1289_s29 = scalar_lea.vmem %s1383_s5, %s1113_s18  ;;  %s1299_s15 = scalar_lea.vmem %s1384_s6, %s1113_s18 }
 0x16a   : > { %v571_v22 = vpop.xlane.xlu1 %570  ;;  %v555_v25 = vpop.xlane.xlu0 %554 }
 0x16b   : > { %594 = vst.msk [vmem:[%s1289_s29 + $0x48] sm:$0xff] %vm584_vm2, %v571_v22  ;;  %586 = vst.msk [vmem:[%s1289_s29 + $0x8] sm:$0xff] %vm584_vm2, %v555_v25 }
 0x16e   : > { %v627_v26 = vpop.xlane.xlu1 %626  ;;  %v553_v27 = vpop.xlane.xlu0 %552 }
 0x16f   : > { %657 = vst.msk [vmem:[%s1299_s15 + $0x8] sm:$0xff] %vm584_vm2, %v627_v26  ;;  %585 = vst.msk [vmem:[%s1289_s29] sm:$0xff] %vm584_vm2, %v553_v27 }
 0x172   : > { %v643_v28 = vpop.xlane.xlu1 %642  ;;  %v569_v29 = vpop.xlane.xlu0 %568 }
 0x173   : > { %665 = vst.msk [vmem:[%s1299_s15 + $0x48] sm:$0xff] %vm584_vm2, %v643_v28  ;;  %593 = vst.msk [vmem:[%s1289_s29 + $0x40] sm:$0xff] %vm584_vm2, %v569_v29 }
 0x176   : > { %v625_v30 = vpop.xlane.xlu0 %624  ;;  %v559_v31 = vpop.xlane.xlu1 %558 }
 0x177   : > { %656 = vst.msk [vmem:[%s1299_s15] sm:$0xff] %vm584_vm2, %v625_v30  ;;  %588 = vst.msk [vmem:[%s1289_s29 + $0x18] sm:$0xff] %vm584_vm2, %v559_v31 }
 0x17a   : > { %v641_v32 = vpop.xlane.xlu0 %640  ;;  %v575_v33 = vpop.xlane.xlu1 %574 }
 0x17b   : > { %664 = vst.msk [vmem:[%s1299_s15 + $0x40] sm:$0xff] %vm584_vm2, %v641_v32  ;;  %596 = vst.msk [vmem:[%s1289_s29 + $0x58] sm:$0xff] %vm584_vm2, %v575_v33 }
 0x17e   : > { %v573_v34 = vpop.xlane.xlu0 %572  ;;  %v631_v35 = vpop.xlane.xlu1 %630 }
 0x17f   : > { %595 = vst.msk [vmem:[%s1289_s29 + $0x50] sm:$0xff] %vm584_vm2, %v573_v34  ;;  %659 = vst.msk [vmem:[%s1299_s15 + $0x18] sm:$0xff] %vm584_vm2, %v631_v35 }
 0x182   : > { %v647_v36 = vpop.xlane.xlu1 %646  ;;  %v629_v37 = vpop.xlane.xlu0 %628 }
 0x183   : > { %667 = vst.msk [vmem:[%s1299_s15 + $0x58] sm:$0xff] %vm584_vm2, %v647_v36  ;;  %658 = vst.msk [vmem:[%s1299_s15 + $0x10] sm:$0xff] %vm584_vm2, %v629_v37 }
 0x186   : > { %v645_v38 = vpop.xlane.xlu0 %644  ;;  %v557_v39 = vpop.xlane.xlu1 %556 }
 0x187   : > { %666 = vst.msk [vmem:[%s1299_s15 + $0x50] sm:$0xff] %vm584_vm2, %v645_v38  ;;  %587 = vst.msk [vmem:[%s1289_s29 + $0x10] sm:$0xff] %vm584_vm2, %v557_v39 }
 0x18a   : > { %v563_v40 = vpop.xlane.xlu1 %562  ;;  %v561_v41 = vpop.xlane.xlu0 %560 }
 0x18b   : > { %590 = vst.msk [vmem:[%s1289_s29 + $0x28] sm:$0xff] %vm584_vm2, %v563_v40  ;;  %589 = vst.msk [vmem:[%s1289_s29 + $0x20] sm:$0xff] %vm584_vm2, %v561_v41 }
 0x18e   : > { %v579_v42 = vpop.xlane.xlu1 %578  ;;  %v577_v43 = vpop.xlane.xlu0 %576 }
 0x18f   : > { %598 = vst.msk [vmem:[%s1289_s29 + $0x68] sm:$0xff] %vm584_vm2, %v579_v42  ;;  %597 = vst.msk [vmem:[%s1289_s29 + $0x60] sm:$0xff] %vm584_vm2, %v577_v43 }
 0x192   : > { %v635_v44 = vpop.xlane.xlu1 %634  ;;  %v633_v45 = vpop.xlane.xlu0 %632 }
 0x193   : > { %661 = vst.msk [vmem:[%s1299_s15 + $0x28] sm:$0xff] %vm584_vm2, %v635_v44  ;;  %660 = vst.msk [vmem:[%s1299_s15 + $0x20] sm:$0xff] %vm584_vm2, %v633_v45 }
 0x196   : > { %v651_v46 = vpop.xlane.xlu1 %650  ;;  %v649_v47 = vpop.xlane.xlu0 %648 }
 0x197   : > { %669 = vst.msk [vmem:[%s1299_s15 + $0x68] sm:$0xff] %vm584_vm2, %v651_v46  ;;  %668 = vst.msk [vmem:[%s1299_s15 + $0x60] sm:$0xff] %vm584_vm2, %v649_v47 }
 0x19a   : > { %v567_v48 = vpop.xlane.xlu1 %566  ;;  %v565_v49 = vpop.xlane.xlu0 %564 }
 0x19b   : > { %592 = vst.msk [vmem:[%s1289_s29 + $0x38] sm:$0xff] %vm584_vm2, %v567_v48  ;;  %591 = vst.msk [vmem:[%s1289_s29 + $0x30] sm:$0xff] %vm584_vm2, %v565_v49 }
 0x19e   : > { %v583_v50 = vpop.xlane.xlu1 %582  ;;  %v581_v51 = vpop.xlane.xlu0 %580 }
 0x19f   : > { %600 = vst.msk [vmem:[%s1289_s29 + $0x78] sm:$0xff] %vm584_vm2, %v583_v50  ;;  %599 = vst.msk [vmem:[%s1289_s29 + $0x70] sm:$0xff] %vm584_vm2, %v581_v51 }
 0x1a2   : > { %v639_v52 = vpop.xlane.xlu1 %638  ;;  %v637_v53 = vpop.xlane.xlu0 %636 }
 0x1a3   : > { %663 = vst.msk [vmem:[%s1299_s15 + $0x38] sm:$0xff] %vm584_vm2, %v639_v52  ;;  %662 = vst.msk [vmem:[%s1299_s15 + $0x30] sm:$0xff] %vm584_vm2, %v637_v53 }
 0x1a6   : > { %v655_v54 = vpop.xlane.xlu1 %654  ;;  %v653_v55 = vpop.xlane.xlu0 %652 }
 0x1a7   : > { %671 = vst.msk [vmem:[%s1299_s15 + $0x78] sm:$0xff] %vm584_vm2, %v655_v54  ;;  %670 = vst.msk [vmem:[%s1299_s15 + $0x70] sm:$0xff] %vm584_vm2, %v653_v55 }
 0x1a8 PF: > { %p917_p5 = scmp.ge.s32.totalorder %s1012_s24, 2  ;;  %s719_s18 = sand.u32 1, %s1000_s21  }
 0x1a9   : > { %s720_s19 = scalar_lea.sflag [#allocation3], %s719_s18 }
 0x1aa   : > { %p914_p13 = pnand %p917_p5, %p1094_p6 }
 0x1ac   : > { %p915_p0 = pneg %p914_p13 }
 0x1ae   : > { %995 = dma.done.wait (%p915_p0), %s720_s19, 2048  }
 0x1af   : > { %997 = vsyncadd (%p915_p0), %s720_s19, 4294965248  ;;  %p17_p1 = scmp.ge.s32.totalorder %s1077_s27, 4   ;;  %s1387_s21 = smov %s1004_s22 }
 0x1b0   : > { %s1388_s22 = smov %s1008_s23  ;;  %s1389_s23 = smov %s1088_s30 }
 0x1b1   : > { %s1390_s24 = smov %s1077_s27  ;;  %19 = sbr.rel (!%p17_p1) target bundleno = 3 (0x3), region = 95 }
 0x1b6   :  { %741 = vsyncpa [#allocation3], 1 }
 0x1b7   :  { %743 = vsyncpa [#allocation3 + $0x1], 1 }

</bundles_post_ra>
